<compile_context>
chip_gen: v6e
topology: v6e:2x2x1
jax: 0.10.0
libtpu: 0.0.40
codegen_flags: <defaults>
</compile_context>

<pallas_src>
import jax
import jax.numpy as jnp
from jax.experimental import pallas as pl
from jax.experimental.pallas import tpu as pltpu


def _mha_kernel(q_ref, k_ref, v_ref,
                wq_ref, wk_ref, wv_ref, wo_ref,
                bcol_ref, bk_ref,
                o_ref):
    # q_ref: (B, E, Lq) bf16  (native q1 layout; transpose folded into the math)
    # k_ref: (B, S,  E) bf16
    # v_ref: (B, E,  S) bf16  (native v3 layout)
    # wq_ref: (E, E) bf16, 1/sqrt(E) pre-folded      (used as   Wq @ q)
    # wk_ref: (E, E) bf16, pre-transposed Wk^T       (used as   k @ Wk^T)
    # wv_ref, wo_ref: (E, E) bf16                    (used as   W  @ x)
    # bcol_ref: (E, 3) f32 -> columns [bq*scale | bv | bo]
    # bk_ref:   (1, E) f32
    # o_ref:    (B, E, Lq) f32  (feature-major output; wrapper swaps back)
    wq = wq_ref[...]
    wkT = wk_ref[...]
    wv = wv_ref[...]
    wo = wo_ref[...]
    bcol = bcol_ref[...]
    bq_c = bcol[:, 0:1]          # (E, 1)
    bv_c = bcol[:, 1:2]          # (E, 1)
    bo_c = bcol[:, 2:3]          # (E, 1)
    bk_r = bk_ref[...]           # (1, E)

    B = q_ref.shape[0]
    for b in range(B):           # static unroll; no grid => no per-step overhead
        qn = q_ref[b]            # (E, Lq) bf16
        kn = k_ref[b]            # (S, E)  bf16
        vn = v_ref[b]            # (E, S)  bf16

        # Feature-major in-projections: all plain (untransposed) MXU matmuls.
        qp_t = jnp.dot(wq, qn, preferred_element_type=jnp.float32) + bq_c   # (E, Lq)
        kp = jnp.dot(kn, wkT, preferred_element_type=jnp.float32) + bk_r    # (S, E)
        vp_t = jnp.dot(wv, vn, preferred_element_type=jnp.float32) + bv_c   # (E, S)

        # Scores in (S, Lq) layout: kp @ qp_t  -- plain matmul, no kp.T relayout.
        s_t = jnp.dot(kp.astype(jnp.bfloat16), qp_t.astype(jnp.bfloat16),
                      preferred_element_type=jnp.float32)                   # (S, Lq)

        # Numerically-stable softmax over the key axis (axis 0), kept in f32.
        m = jnp.max(s_t, axis=0, keepdims=True)                             # (1, Lq)
        p_t = jnp.exp(s_t - m)
        denom = jnp.sum(p_t, axis=0, keepdims=True)                         # (1, Lq)

        # Unnormalized context, then normalize the (E, Lq) context with an
        # EUP reciprocal instead of dividing the probability matrix.
        ctx_t = jnp.dot(vp_t.astype(jnp.bfloat16), p_t.astype(jnp.bfloat16),
                        preferred_element_type=jnp.float32)                 # (E, Lq)
        ctx_t = ctx_t * pl.reciprocal(denom, approx=True)

        # Out-projection, still feature-major.
        out_t = jnp.dot(wo, ctx_t.astype(jnp.bfloat16),
                        preferred_element_type=jnp.float32) + bo_c          # (E, Lq)
        o_ref[b] = out_t.astype(o_ref.dtype)


def mha_forward(q1, k2, v3, params):
    """Model.forward: q1/v3 are transposed on their last two dims, then fed
    through single-head MultiheadAttention together with k2 (dropout_p=0)."""
    wq, wk, wv, bq, bk, bv, wo, bo = params
    B, E, Lq = q1.shape          # q1 native layout (B, E, Lq) -> q = (B, Lq, E)
    _, S, _ = k2.shape

    scale = 1.0 / (float(E) ** 0.5)

    # One-time weight prep (constant-folded under jit): fold the q-scale,
    # pre-transpose only Wk, cast MXU operands to bf16.
    wq_s = (wq * scale).astype(jnp.bfloat16)
    wkT = wk.T.astype(jnp.bfloat16)
    wv_b = wv.astype(jnp.bfloat16)
    wo_b = wo.astype(jnp.bfloat16)
    b_col = jnp.stack([bq * scale, bv, bo], axis=1).astype(jnp.float32)   # (E, 3)
    bk_r = bk.reshape(1, E).astype(jnp.float32)

    q1b = q1.astype(jnp.bfloat16)
    k2b = k2.astype(jnp.bfloat16)
    v3b = v3.astype(jnp.bfloat16)

    vmem = lambda: pl.BlockSpec(memory_space=pltpu.MemorySpace.VMEM)

    out_t = pl.pallas_call(
        _mha_kernel,
        out_shape=jax.ShapeDtypeStruct((B, E, Lq), jnp.float32),
        in_specs=[vmem() for _ in range(9)],
        out_specs=vmem(),
    )(q1b, k2b, v3b, wq_s, wkT, wv_b, wo_b, b_col, bk_r)

    # Kernel emits feature-major (B, E, Lq); single cheap swap of the small output.
    return jnp.swapaxes(out_t, -2, -1)       # (B, Lq, E)


def _mha_reference(q1, k2, v3, params):
    """Pure-JAX f32 reference for the same semantics."""
    wq, wk, wv, bq, bk, bv, wo, bo = params
    q = jnp.swapaxes(q1, -2, -1)             # (B, Lq, E)
    v = jnp.swapaxes(v3, -2, -1)             # (B, S,  E)
    k = k2                                   # (B, S,  E)
    E = q.shape[-1]
    qp = q @ wq.T + bq
    kp = k @ wk.T + bk
    vp = v @ wv.T + bv
    s = jnp.einsum('bqe,bke->bqk', qp, kp) / jnp.sqrt(jnp.float32(E))
    p = jax.nn.softmax(s, axis=-1)
    ctx = jnp.einsum('bqk,bke->bqe', p, vp)
    return ctx @ wo.T + bo


def init_params(key, dim_in):
    """Deterministic stand-ins for nn.MultiheadAttention(dim_in, 1) params:
    in-proj split into Wq/Wk/Wv (E,E) + biases, and out_proj (E,E) + bias."""
    ks = jax.random.split(key, 8)
    bound = (6.0 / (2.0 * dim_in)) ** 0.5    # xavier_uniform-like
    wq = jax.random.uniform(ks[0], (dim_in, dim_in), jnp.float32, -bound, bound)
    wk = jax.random.uniform(ks[1], (dim_in, dim_in), jnp.float32, -bound, bound)
    wv = jax.random.uniform(ks[2], (dim_in, dim_in), jnp.float32, -bound, bound)
    wo = jax.random.uniform(ks[3], (dim_in, dim_in), jnp.float32, -bound, bound)
    bq = jax.random.uniform(ks[4], (dim_in,), jnp.float32, -0.1, 0.1)
    bk = jax.random.uniform(ks[5], (dim_in,), jnp.float32, -0.1, 0.1)
    bv = jax.random.uniform(ks[6], (dim_in,), jnp.float32, -0.1, 0.1)
    bo = jax.random.uniform(ks[7], (dim_in,), jnp.float32, -0.1, 0.1)
    return (wq, wk, wv, bq, bk, bv, wo, bo)


if __name__ == "__main__":
    # Small, self-consistent shapes: B=2 batch, Lq=8 query positions,
    # S=16 key/value positions, dim_in=64 embed dim (matches the module's dim_in).
    B, Lq, S, dim_in = 2, 8, 16, 64
    key = jax.random.PRNGKey(0)
    k_q1, k_k2, k_v3, k_p = jax.random.split(key, 4)

    # q1 / v3 are laid out so that the module's transpose(-2,-1) yields
    # (B, Lq, E) and (B, S, E) respectively.
    q1 = jax.random.normal(k_q1, (B, dim_in, Lq), jnp.float32)
    k2 = jax.random.normal(k_k2, (B, S, dim_in), jnp.float32)
    v3 = jax.random.normal(k_v3, (B, dim_in, S), jnp.float32)

    params = init_params(k_p, dim_in)

    out = jax.block_until_ready(mha_forward(q1, k2, v3, params))
    ref = jax.block_until_ready(_mha_reference(q1, k2, v3, params))

    assert out.shape == (B, Lq, dim_in), out.shape
    assert bool(jnp.all(jnp.isfinite(out)))
    # Loose tolerance: kernel runs its matmuls in bf16 with f32 accumulation.
    assert bool(jnp.allclose(out, ref, rtol=2e-1, atol=2e-1)), \
        float(jnp.max(jnp.abs(out - ref)))
    print("KERNEL_OK")
</pallas_src>

<mosaic_0001>
module attributes {stable_mosaic.version = 11 : i64} {
  func.func @_mha_kernel(%arg0: memref<2x64x8xbf16, #tpu.memory_space<vmem>>, %arg1: memref<2x16x64xbf16, #tpu.memory_space<vmem>>, %arg2: memref<2x64x16xbf16, #tpu.memory_space<vmem>>, %arg3: memref<64x64xbf16, #tpu.memory_space<vmem>>, %arg4: memref<64x64xbf16, #tpu.memory_space<vmem>>, %arg5: memref<64x64xbf16, #tpu.memory_space<vmem>>, %arg6: memref<64x64xbf16, #tpu.memory_space<vmem>>, %arg7: memref<64x3xf32, #tpu.memory_space<vmem>>, %arg8: memref<1x64xf32, #tpu.memory_space<vmem>>, %arg9: memref<2x64x8xf32, #tpu.memory_space<vmem>>) attributes {dimension_semantics = [], scalar_prefetch = 0 : i64, scratch_operands = 0 : i64, tpu.core_type = #tpu.core_type<tc>} {
    %c0 = arith.constant 0 : index
    %c0_0 = arith.constant 0 : index
    %0 = vector.load %arg3[%c0, %c0_0] : memref<64x64xbf16, #tpu.memory_space<vmem>>, vector<64x64xbf16>
    %c0_1 = arith.constant 0 : index
    %c0_2 = arith.constant 0 : index
    %1 = vector.load %arg4[%c0_1, %c0_2] : memref<64x64xbf16, #tpu.memory_space<vmem>>, vector<64x64xbf16>
    %c0_3 = arith.constant 0 : index
    %c0_4 = arith.constant 0 : index
    %2 = vector.load %arg5[%c0_3, %c0_4] : memref<64x64xbf16, #tpu.memory_space<vmem>>, vector<64x64xbf16>
    %c0_5 = arith.constant 0 : index
    %c0_6 = arith.constant 0 : index
    %3 = vector.load %arg6[%c0_5, %c0_6] : memref<64x64xbf16, #tpu.memory_space<vmem>>, vector<64x64xbf16>
    %c0_7 = arith.constant 0 : index
    %c0_8 = arith.constant 0 : index
    %4 = vector.load %arg7[%c0_7, %c0_8] : memref<64x3xf32, #tpu.memory_space<vmem>>, vector<64x3xf32>
    %5 = vector.extract_strided_slice %4 {offsets = [0, 0], sizes = [64, 1], strides = [1, 1]} : vector<64x3xf32> to vector<64x1xf32>
    %6 = vector.extract_strided_slice %4 {offsets = [0, 1], sizes = [64, 1], strides = [1, 1]} : vector<64x3xf32> to vector<64x1xf32>
    %7 = vector.extract_strided_slice %4 {offsets = [0, 2], sizes = [64, 1], strides = [1, 1]} : vector<64x3xf32> to vector<64x1xf32>
    %c0_9 = arith.constant 0 : index
    %c0_10 = arith.constant 0 : index
    %8 = vector.load %arg8[%c0_9, %c0_10] : memref<1x64xf32, #tpu.memory_space<vmem>>, vector<1x64xf32>
    %c0_11 = arith.constant 0 : index
    %c0_12 = arith.constant 0 : index
    %c0_13 = arith.constant 0 : index
    %9 = vector.load %arg0[%c0_11, %c0_12, %c0_13] : memref<2x64x8xbf16, #tpu.memory_space<vmem>>, vector<1x64x8xbf16>
    %10 = vector.shape_cast %9 : vector<1x64x8xbf16> to vector<64x8xbf16>
    %c0_14 = arith.constant 0 : index
    %c0_15 = arith.constant 0 : index
    %c0_16 = arith.constant 0 : index
    %11 = vector.load %arg1[%c0_14, %c0_15, %c0_16] : memref<2x16x64xbf16, #tpu.memory_space<vmem>>, vector<1x16x64xbf16>
    %12 = vector.shape_cast %11 : vector<1x16x64xbf16> to vector<16x64xbf16>
    %c0_17 = arith.constant 0 : index
    %c0_18 = arith.constant 0 : index
    %c0_19 = arith.constant 0 : index
    %13 = vector.load %arg2[%c0_17, %c0_18, %c0_19] : memref<2x64x16xbf16, #tpu.memory_space<vmem>>, vector<1x64x16xbf16>
    %14 = vector.shape_cast %13 : vector<1x64x16xbf16> to vector<64x16xbf16>
    %cst = arith.constant dense<0.000000e+00> : vector<64x8xf32>
    %15 = tpu.matmul %0, %10, %cst {dimension_numbers = #tpu.dot_dimension_numbers<[1], [0], [0], [1], [0, 0, 1, 1], [], []>} : vector<64x64xbf16>, vector<64x8xbf16>, vector<64x8xf32> -> vector<64x8xf32>
    %16 = vector.broadcast %5 : vector<64x1xf32> to vector<64x8xf32>
    %17 = arith.addf %15, %16 : vector<64x8xf32>
    %cst_20 = arith.constant dense<0.000000e+00> : vector<16x64xf32>
    %18 = tpu.matmul %12, %1, %cst_20 {dimension_numbers = #tpu.dot_dimension_numbers<[1], [0], [0], [1], [0, 0, 1, 1], [], []>} : vector<16x64xbf16>, vector<64x64xbf16>, vector<16x64xf32> -> vector<16x64xf32>
    %19 = vector.broadcast %8 : vector<1x64xf32> to vector<16x64xf32>
    %20 = arith.addf %18, %19 : vector<16x64xf32>
    %cst_21 = arith.constant dense<0.000000e+00> : vector<64x16xf32>
    %21 = tpu.matmul %2, %14, %cst_21 {dimension_numbers = #tpu.dot_dimension_numbers<[1], [0], [0], [1], [0, 0, 1, 1], [], []>} : vector<64x64xbf16>, vector<64x16xbf16>, vector<64x16xf32> -> vector<64x16xf32>
    %22 = vector.broadcast %6 : vector<64x1xf32> to vector<64x16xf32>
    %23 = arith.addf %21, %22 : vector<64x16xf32>
    %24 = arith.truncf %20 : vector<16x64xf32> to vector<16x64xbf16>
    %25 = arith.truncf %17 : vector<64x8xf32> to vector<64x8xbf16>
    %cst_22 = arith.constant dense<0.000000e+00> : vector<16x8xf32>
    %26 = tpu.matmul %24, %25, %cst_22 {dimension_numbers = #tpu.dot_dimension_numbers<[1], [0], [0], [1], [0, 0, 1, 1], [], []>} : vector<16x64xbf16>, vector<64x8xbf16>, vector<16x8xf32> -> vector<16x8xf32>
    %cst_23 = arith.constant dense<0xFF800000> : vector<8xf32>
    %27 = vector.multi_reduction <maximumf>, %26, %cst_23 [0] : vector<16x8xf32> to vector<8xf32>
    %28 = vector.shape_cast %27 : vector<8xf32> to vector<1x8xf32>
    %29 = vector.broadcast %28 : vector<1x8xf32> to vector<16x8xf32>
    %30 = arith.subf %26, %29 : vector<16x8xf32>
    %31 = math.exp %30 : vector<16x8xf32>
    %cst_24 = arith.constant dense<0.000000e+00> : vector<8xf32>
    %32 = vector.multi_reduction <add>, %31, %cst_24 [0] : vector<16x8xf32> to vector<8xf32>
    %33 = vector.shape_cast %32 : vector<8xf32> to vector<1x8xf32>
    %34 = arith.truncf %23 : vector<64x16xf32> to vector<64x16xbf16>
    %35 = arith.truncf %31 : vector<16x8xf32> to vector<16x8xbf16>
    %cst_25 = arith.constant dense<0.000000e+00> : vector<64x8xf32>
    %36 = tpu.matmul %34, %35, %cst_25 {dimension_numbers = #tpu.dot_dimension_numbers<[1], [0], [0], [1], [0, 0, 1, 1], [], []>} : vector<64x16xbf16>, vector<16x8xbf16>, vector<64x8xf32> -> vector<64x8xf32>
    %37 = tpu.reciprocal %33 {approx = true} : vector<1x8xf32> -> vector<1x8xf32>
    %38 = vector.broadcast %37 : vector<1x8xf32> to vector<64x8xf32>
    %39 = arith.mulf %36, %38 : vector<64x8xf32>
    %40 = arith.truncf %39 : vector<64x8xf32> to vector<64x8xbf16>
    %cst_26 = arith.constant dense<0.000000e+00> : vector<64x8xf32>
    %41 = tpu.matmul %3, %40, %cst_26 {dimension_numbers = #tpu.dot_dimension_numbers<[1], [0], [0], [1], [0, 0, 1, 1], [], []>} : vector<64x64xbf16>, vector<64x8xbf16>, vector<64x8xf32> -> vector<64x8xf32>
    %42 = vector.broadcast %7 : vector<64x1xf32> to vector<64x8xf32>
    %43 = arith.addf %41, %42 : vector<64x8xf32>
    %c0_27 = arith.constant 0 : index
    %c0_28 = arith.constant 0 : index
    %c0_29 = arith.constant 0 : index
    %44 = vector.load %arg9[%c0_27, %c0_28, %c0_29] : memref<2x64x8xf32, #tpu.memory_space<vmem>>, vector<1x64x8xf32>
    %45 = vector.shape_cast %44 : vector<1x64x8xf32> to vector<64x8xf32>
    %46 = vector.shape_cast %43 : vector<64x8xf32> to vector<1x64x8xf32>
    tpu.vector_store %arg9[%c0_27, %c0_28, %c0_29], %46 {strides = array<i32>} : memref<2x64x8xf32, #tpu.memory_space<vmem>>, vector<1x64x8xf32>,
    %c1 = arith.constant 1 : index
    %c0_30 = arith.constant 0 : index
    %c0_31 = arith.constant 0 : index
    %47 = vector.load %arg0[%c1, %c0_30, %c0_31] : memref<2x64x8xbf16, #tpu.memory_space<vmem>>, vector<1x64x8xbf16>
    %48 = vector.shape_cast %47 : vector<1x64x8xbf16> to vector<64x8xbf16>
    %c1_32 = arith.constant 1 : index
    %c0_33 = arith.constant 0 : index
    %c0_34 = arith.constant 0 : index
    %49 = vector.load %arg1[%c1_32, %c0_33, %c0_34] : memref<2x16x64xbf16, #tpu.memory_space<vmem>>, vector<1x16x64xbf16>
    %50 = vector.shape_cast %49 : vector<1x16x64xbf16> to vector<16x64xbf16>
    %c1_35 = arith.constant 1 : index
    %c0_36 = arith.constant 0 : index
    %c0_37 = arith.constant 0 : index
    %51 = vector.load %arg2[%c1_35, %c0_36, %c0_37] : memref<2x64x16xbf16, #tpu.memory_space<vmem>>, vector<1x64x16xbf16>
    %52 = vector.shape_cast %51 : vector<1x64x16xbf16> to vector<64x16xbf16>
    %cst_38 = arith.constant dense<0.000000e+00> : vector<64x8xf32>
    %53 = tpu.matmul %0, %48, %cst_38 {dimension_numbers = #tpu.dot_dimension_numbers<[1], [0], [0], [1], [0, 0, 1, 1], [], []>} : vector<64x64xbf16>, vector<64x8xbf16>, vector<64x8xf32> -> vector<64x8xf32>
    %54 = vector.broadcast %5 : vector<64x1xf32> to vector<64x8xf32>
    %55 = arith.addf %53, %54 : vector<64x8xf32>
    %cst_39 = arith.constant dense<0.000000e+00> : vector<16x64xf32>
    %56 = tpu.matmul %50, %1, %cst_39 {dimension_numbers = #tpu.dot_dimension_numbers<[1], [0], [0], [1], [0, 0, 1, 1], [], []>} : vector<16x64xbf16>, vector<64x64xbf16>, vector<16x64xf32> -> vector<16x64xf32>
    %57 = vector.broadcast %8 : vector<1x64xf32> to vector<16x64xf32>
    %58 = arith.addf %56, %57 : vector<16x64xf32>
    %cst_40 = arith.constant dense<0.000000e+00> : vector<64x16xf32>
    %59 = tpu.matmul %2, %52, %cst_40 {dimension_numbers = #tpu.dot_dimension_numbers<[1], [0], [0], [1], [0, 0, 1, 1], [], []>} : vector<64x64xbf16>, vector<64x16xbf16>, vector<64x16xf32> -> vector<64x16xf32>
    %60 = vector.broadcast %6 : vector<64x1xf32> to vector<64x16xf32>
    %61 = arith.addf %59, %60 : vector<64x16xf32>
    %62 = arith.truncf %58 : vector<16x64xf32> to vector<16x64xbf16>
    %63 = arith.truncf %55 : vector<64x8xf32> to vector<64x8xbf16>
    %cst_41 = arith.constant dense<0.000000e+00> : vector<16x8xf32>
    %64 = tpu.matmul %62, %63, %cst_41 {dimension_numbers = #tpu.dot_dimension_numbers<[1], [0], [0], [1], [0, 0, 1, 1], [], []>} : vector<16x64xbf16>, vector<64x8xbf16>, vector<16x8xf32> -> vector<16x8xf32>
    %cst_42 = arith.constant dense<0xFF800000> : vector<8xf32>
    %65 = vector.multi_reduction <maximumf>, %64, %cst_42 [0] : vector<16x8xf32> to vector<8xf32>
    %66 = vector.shape_cast %65 : vector<8xf32> to vector<1x8xf32>
    %67 = vector.broadcast %66 : vector<1x8xf32> to vector<16x8xf32>
    %68 = arith.subf %64, %67 : vector<16x8xf32>
    %69 = math.exp %68 : vector<16x8xf32>
    %cst_43 = arith.constant dense<0.000000e+00> : vector<8xf32>
    %70 = vector.multi_reduction <add>, %69, %cst_43 [0] : vector<16x8xf32> to vector<8xf32>
    %71 = vector.shape_cast %70 : vector<8xf32> to vector<1x8xf32>
    %72 = arith.truncf %61 : vector<64x16xf32> to vector<64x16xbf16>
    %73 = arith.truncf %69 : vector<16x8xf32> to vector<16x8xbf16>
    %cst_44 = arith.constant dense<0.000000e+00> : vector<64x8xf32>
    %74 = tpu.matmul %72, %73, %cst_44 {dimension_numbers = #tpu.dot_dimension_numbers<[1], [0], [0], [1], [0, 0, 1, 1], [], []>} : vector<64x16xbf16>, vector<16x8xbf16>, vector<64x8xf32> -> vector<64x8xf32>
    %75 = tpu.reciprocal %71 {approx = true} : vector<1x8xf32> -> vector<1x8xf32>
    %76 = vector.broadcast %75 : vector<1x8xf32> to vector<64x8xf32>
    %77 = arith.mulf %74, %76 : vector<64x8xf32>
    %78 = arith.truncf %77 : vector<64x8xf32> to vector<64x8xbf16>
    %cst_45 = arith.constant dense<0.000000e+00> : vector<64x8xf32>
    %79 = tpu.matmul %3, %78, %cst_45 {dimension_numbers = #tpu.dot_dimension_numbers<[1], [0], [0], [1], [0, 0, 1, 1], [], []>} : vector<64x64xbf16>, vector<64x8xbf16>, vector<64x8xf32> -> vector<64x8xf32>
    %80 = vector.broadcast %7 : vector<64x1xf32> to vector<64x8xf32>
    %81 = arith.addf %79, %80 : vector<64x8xf32>
    %c1_46 = arith.constant 1 : index
    %c0_47 = arith.constant 0 : index
    %c0_48 = arith.constant 0 : index
    %82 = vector.load %arg9[%c1_46, %c0_47, %c0_48] : memref<2x64x8xf32, #tpu.memory_space<vmem>>, vector<1x64x8xf32>
    %83 = vector.shape_cast %82 : vector<1x64x8xf32> to vector<64x8xf32>
    %84 = vector.shape_cast %81 : vector<64x8xf32> to vector<1x64x8xf32>
    tpu.vector_store %arg9[%c1_46, %c0_47, %c0_48], %84 {strides = array<i32>} : memref<2x64x8xf32, #tpu.memory_space<vmem>>, vector<1x64x8xf32>,
    return
  }
}

</mosaic_0001>

<bundles_post_ra>
// kernel: tpu_custom_call.1
= control target key start
LH: loop header
LB: loop body
LE: loop exit
PB: predicated region body
PF: predicated region fallthrough
CT: control target
= control target key end

     0   :  { %v1683_v1 = vmov 0.0   ;;  %vm1684_vm0 = vmmov 0   ;;  %v1685_v3 = vmov 0   ;;  %vm176_vm1 = vcmask 523264   ;;  %s2213_s0 = inlined_call_operand.vmem [shape: bf16[2,64,8], index: 0, kind: input, shape index: {}]   ;;  %s2214_s3 = inlined_call_operand.vmem [shape: bf16[64,64], index: 3, kind: input, shape index: {}]   ;;  %s2215_s4 = inlined_call_operand.vmem [shape: bf16[64,64], index: 4, kind: input, shape index: {}]   ;;  %s2216_s7 = inlined_call_operand.vmem [shape: f32[64,3], index: 7, kind: input, shape index: {}]   ;;  %s2217_s1 = inlined_call_operand.vmem [shape: bf16[2,16,64], index: 1, kind: input, shape index: {}]   ;;  %s2218_s2 = inlined_call_operand.vmem [shape: bf16[2,64,16], index: 2, kind: input, shape index: {}]   ;;  %s2219_s5 = inlined_call_operand.vmem [shape: bf16[64,64], index: 5, kind: input, shape index: {}]   ;;  %s2220_s8 = inlined_call_operand.vmem [shape: f32[1,64], index: 8, kind: input, shape index: {}]   ;;  %s2221_s6 = inlined_call_operand.vmem [shape: bf16[64,64], index: 6, kind: input, shape index: {}]   ;;  %s2222_s9 = inlined_call_operand.vmem [shape: f32[2,64,8], index: 9, kind: output, shape index: {}]  }
   0x1   :  { %v1637_v0 = vld [vmem:[%s2213_s0 + $0x18] sm:$0xff]   ;;  %1478 = vmatprep.subr.bf16.mxu1 %v1683_v1  ;;  %1486 = vmatprep.mubr.msk.bf16.mxu1 %vm1684_vm0, %v1683_v1  ;;  %v1638_v2 = vld [vmem:[%s2213_s0 + $0x10] sm:$0xff]   ;;  %v1639_v4 = vld [vmem:[%s2213_s0 + $0x8] sm:$0xff]   ;;  %v1686_v24 = vmov 1   ;;  %vm565_vm2 = vcmask 130048   ;;  %vm535_vm3 = vcmask 64512  }
   0x2   :  { %1631 = vset.pattern.permute.xlu0 %v1685_v3  ;;  %1632 = vset.pattern.permute.xlu1 %v1685_v3  ;;  %v1753_v5 = vld [vmem:[%s2214_s3] sm:$0xff]   ;;  %v1760_v6 = vld [vmem:[%s2215_s4 + $0x18] sm:$0xff]   ;;  %v1769_v8 = vld [vmem:[%s2215_s4 + $0x10] sm:$0xff]  }
   0x3   :  { %1462 = vmatprep.subr.bf16.mxu0 %v1637_v0  ;;  %1470 = vmatprep.mubr.msk.bf16.mxu0 %vm176_vm1, %v1753_v5  ;;  %v1640_v7 = vld [vmem:[%s2213_s0] sm:$0xff]   ;;  %v1776_v9 = vld [vmem:[%s2215_s4 + $0x8] sm:$0xff]   ;;  %v1782_v10 = vld [vmem:[%s2216_s7 + $0x30] sm:$0xff] }
   0x4   :  { %1463 = vmatpush3.bf16.msra.mxu0 %v1637_v0  ;;  %1479 = vmatpush3.bf16.msra.mxu1 %v1760_v6  ;;  %v1787_v11 = vld [vmem:[%s2214_s3 + $0x8] sm:$0xff]   ;;  %v1793_v12 = vld [vmem:[%s2216_s7 + $0x20] sm:$0xff]  ;;  %v1798_v13 = vld [vmem:[%s2214_s3 + $0x10] sm:$0xff]  }
   0x5   :  { %1464 = vmatprep.subr.bf16.mxu0 %v1638_v2  ;;  %1480 = vmatprep.subr.bf16.mxu1 %v1683_v1  ;;  %v1803_v14 = vld [vmem:[%s2215_s4] sm:$0xff]   ;;  %v1808_v15 = vld [vmem:[%s2216_s7 + $0x38] sm:$0xff]  ;;  %v1815_v16 = vld [vmem:[%s2216_s7 + $0x28] sm:$0xff] }
   0x6   :  { %124 = vperm.xlu0 %1631, %v1782_v10   ;;  %114 = vperm.xlu1 %1632, %v1793_v12   ;;  %v1649_v17 = vld [vmem:[%s2217_s1] sm:$0xff]   ;;  %v1830_v18 = vld [vmem:[%s2216_s7 + $0x10] sm:$0xff]  ;;  %v1836_v19 = vld [vmem:[%s2216_s7 + $0x18] sm:$0xff] }
   0x7   :  { %v1842_v20 = vld [vmem:[%s2214_s3 + $0x18] sm:$0xff]   ;;  %v1850_v21 = vld [vmem:[%s2216_s7] sm:$0xff]  ;;  %v1855_v22 = vld [vmem:[%s2216_s7 + $0x8] sm:$0xff] }
   0x8   :  { %1465 = vmatpush3.bf16.msra.mxu0 %v1638_v2  ;;  %1481 = vmatpush3.bf16.msra.mxu1 %v1769_v8  ;;  %v1650_v23 = vld [vmem:[%s2218_s2 + $0x18] sm:$0xff]   ;;  %v1651_v25 = vld [vmem:[%s2218_s2 + $0x10] sm:$0xff]   ;;  %v1652_v26 = vld [vmem:[%s2218_s2 + $0x8] sm:$0xff]  }
   0x9   :  { %1466 = vmatprep.subr.bf16.mxu0 %v1639_v4  ;;  %1482 = vmatprep.subr.bf16.mxu1 %v1683_v1  ;;  %v1877_v27 = vld [vmem:[%s2219_s5] sm:$0xff]   ;;  %v1893_v29 = vld [vmem:[%s2219_s5 + $0x8] sm:$0xff]   ;;  %v1898_v30 = vld [vmem:[%s2219_s5 + $0x10] sm:$0xff]  }
   0xa   :  { %129 = vperm.xlu0 %1631, %v1808_v15   ;;  %119 = vperm.xlu1 %1632, %v1815_v16   ;;  %v1653_v28 = vld [vmem:[%s2218_s2] sm:$0xff]   ;;  %v1907_v31 = vld [vmem:[%s2219_s5 + $0x18] sm:$0xff]  }
   0xb   :  { %v1939_v62 = vld [vmem:[%s2220_s8] ss:$0 sm:$0xff] }
   0xc   :  { %1467 = vmatpush3.bf16.msra.mxu0 %v1639_v4  ;;  %1483 = vmatpush3.bf16.msra.mxu1 %v1776_v9 }
   0xd   :  { %1468 = vmatprep.subr.bf16.mxu0 %v1640_v7  ;;  %1484 = vmatprep.subr.bf16.mxu1 %v1683_v1 }
   0xe   :  { %104 = vperm.xlu0 %1631, %v1830_v18   ;;  %109 = vperm.xlu1 %1632, %v1836_v19  }
  0x10   :  { %1469 = vmatpush3.bf16.msra.mxu0 %v1640_v7  ;;  %1485 = vmatpush3.bf16.msra.mxu1 %v1803_v14 }
  0x11   :  { %1506 = vmatprep.subr.bf16.mxu1 %v1683_v1  ;;  %1490 = vmatprep.subr.bf16.mxu0 %v1650_v23 }
  0x12   :  { %94 = vperm.xlu0 %1631, %v1850_v21   ;;  %99 = vperm.xlu1 %1632, %v1855_v22  }
  0x13   :  { %1471 = vmatmul.mubr.msk.bf16.vlgmr.msra.gmra.mxu0 %vm176_vm1, %v1787_v11  ;;  %1487 = vmatmul.mubr.msk.bf16.vlgmr.msra.gmra.mxu1 %vm176_vm1, %v1649_v17 }
  0x14   :  { %1474 = vmatprep.mubr.msk.bf16.mxu0 %vm176_vm1, %v1798_v13  ;;  %1514 = vmatprep.mubr.msk.bf16.mxu1 %vm1684_vm0, %v1683_v1 }
  0x15   :  { %1491 = vmatpush3.bf16.msra.mxu0 %v1650_v23 }
  0x16   :  { %1634 = vset.pattern.permute.xlu1 %v1686_v24  ;;  %1633 = vset.pattern.permute.xlu0 %v1686_v24 }
  0x17   :  { %338 = vperm.xlu1 %1634, %v1855_v22   ;;  %334 = vperm.xlu0 %1633, %v1850_v21  }
  0x18   :  { %1492 = vmatprep.subr.bf16.mxu0 %v1651_v25 }
  0x19   :  { %1493 = vmatpush3.bf16.msra.mxu0 %v1651_v25 }
  0x1a   :  { %1494 = vmatprep.subr.bf16.mxu0 %v1652_v26 }
  0x1b   :  { %1475 = vmatmul.mubr.msk.bf16.gmra.mxu0 %vm176_vm1, %v1842_v20  ;;  %342 = vperm.xlu1 %1634, %v1830_v18  }
  0x1c   :  { %346 = vperm.xlu0 %1633, %v1836_v19   ;;  %1498 = vmatprep.mubr.msk.bf16.mxu0 %vm176_vm1, %v1877_v27 }
  0x1d   :  { %1495 = vmatpush3.bf16.msra.mxu0 %v1652_v26 }
  0x1e   :  { %1496 = vmatprep.subr.bf16.mxu0 %v1653_v28 }
  0x1f   :  { %350 = vperm.xlu1 %1634, %v1793_v12  }
  0x20   :  { %354 = vperm.xlu0 %1633, %v1815_v16  }
  0x21   :  { %1497 = vmatpush3.bf16.msra.mxu0 %v1653_v28 }
  0x23   :  { %358 = vperm.xlu1 %1634, %v1782_v10  }
  0x24   :  { %362 = vperm.xlu0 %1633, %v1808_v15   ;;  %1499 = vmatmul.mubr.msk.bf16.vlgmr.msra.gmra.mxu0 %vm176_vm1, %v1893_v29 }
  0x25   :  { %1502 = vmatprep.mubr.msk.bf16.mxu0 %vm176_vm1, %v1898_v30 }
  0x2c   :  { %1503 = vmatmul.mubr.msk.bf16.gmra.mxu0 %vm176_vm1, %v1907_v31 }
  0x81   :  { %v1911_v33 = vpop.permute.xlu1 %114  ;;  %v1913_v35 = vpop.permute.xlu0 %124 }
  0x85   :  { %v1915_v40 = vpop.permute.xlu1 %119  ;;  %v1917_v43 = vpop.permute.xlu0 %129 }
  0x89   :  { %v1921_v49 = vpop.permute.xlu1 %109  ;;  %v1924_v53 = vpop.permute.xlu0 %104 }
  0x8d   :  { %v1929_v57 = vpop.permute.xlu1 %99  ;;  %v1932_v59 = vpop.permute.xlu0 %94 }
  0x92   :  { %v1946_v23 = vpop.permute.xlu1 %338  ;;  %v1948_v24 = vpop.permute.xlu0 %334 }
  0x96   :  { %v1950_v26 = vpop.permute.xlu1 %342 }
  0x97   :  { %v1952_v28 = vpop.permute.xlu0 %346 }
  0xd3   :  { %v1472_v32 = vpop.f32.mrf.mxu0  ;;  %v326_v37 = vpop.f32.mrf.mxu1 }
  0xd4   :  { %v232_v58 = vadd.f32 %v1472_v32, %v1924_v53  ;;  %v327_v0 = vadd.f32 %v1939_v62, %v326_v37 }
  0xd5   :  { %v223_v34 = vpop.f32.mrf.mxu0  ;;  %v1488_v39 = vpop.f32.mrf.mxu1 }
  0xd6   :  { %v224_v63 = vadd.f32 %v223_v34, %v1932_v59 }
  0xd7   :  { %v1473_v36 = vpop.f32.mrf.mxu0  ;;  %v329_v42 = vpop.f32.mrf.mxu1 }
  0xd8   :  { %v235_v55 = vadd.f32 %v1473_v36, %v1921_v49  ;;  %v330_v2 = vadd.f32 %v1939_v62, %v329_v42 }
  0xd9   :  { %v226_v38 = vpop.f32.mrf.mxu0  ;;  %v1489_v45 = vpop.f32.mrf.mxu1 }
  0xda   :  { %v488_v60 = vpack.c.bf16 %v235_v55, %v232_v58  ;;  %v227_v61 = vadd.f32 %v226_v38, %v1929_v57  ;;  %v486_v4 = vpack.c.bf16 %v330_v2, %v327_v0 }
  0xdb   :  { %v1476_v41 = vpop.f32.mrf.mxu0 }
  0xdc   :  { %v248_v47 = vadd.f32 %v1476_v41, %v1913_v35  ;;  %v487_v3 = vpack.c.bf16 %v227_v61, %v224_v63 }
  0xdd   :  { %v239_v44 = vpop.f32.mrf.mxu0 }
  0xde   :  { %v240_v54 = vadd.f32 %v239_v44, %v1911_v33 }
  0xdf   :  { %v1477_v46 = vpop.f32.mrf.mxu0 }
  0xe0   :  { %v251_v48 = vadd.f32 %v1477_v46, %v1917_v43 }
  0xe1   :  { %v242_v50 = vpop.f32.mrf.mxu0 }
  0xe2   :  { %v490_v51 = vpack.c.bf16 %v251_v48, %v248_v47  ;;  %v243_v52 = vadd.f32 %v242_v50, %v1915_v40 }
  0xe4   :  { %1507 = vmatpush3.bf16.msra.mxu1 %v490_v51  ;;  %v489_v56 = vpack.c.bf16 %v243_v52, %v240_v54  ;;  %v1500_v7 = vpop.f32.mrf.mxu0 }
  0xe5   :  { %1508 = vmatprep.subr.bf16.mxu1 %v1683_v1  ;;  %v464_v36 = vadd.f32 %v1500_v7, %v1950_v26 }
  0xe6   :  { %v455_v17 = vpop.f32.mrf.mxu0 }
  0xe7   :  { %v456_v34 = vadd.f32 %v455_v17, %v1948_v24 }
  0xe8   :  { %1509 = vmatpush3.bf16.msra.mxu1 %v489_v56  ;;  %v1501_v25 = vpop.f32.mrf.mxu0 }
  0xe9   :  { %1510 = vmatprep.subr.bf16.mxu1 %v1683_v1  ;;  %v467_v37 = vadd.f32 %v1501_v25, %v1952_v28 }
  0xea   :  { %v458_v32 = vpop.f32.mrf.mxu0 }
  0xeb   :  { %v459_v38 = vadd.f32 %v458_v32, %v1946_v23  ;;  %v561_v39 = vpack.c.bf16 %v467_v37, %v464_v36  ;;  %v1964_v36 = vpop.permute.xlu0 %354 }
  0xec   :  { %1511 = vmatpush3.bf16.msra.mxu1 %v488_v60  ;;  %v1504_v2 = vpop.f32.mrf.mxu0 }
  0xed   :  { %1512 = vmatprep.subr.bf16.mxu1 %v1683_v1  ;;  %v560_v41 = vpack.c.bf16 %v459_v38, %v456_v34  ;;  %v1962_v34 = vpop.permute.xlu1 %350 }
  0xf0   :  { %1513 = vmatpush3.bf16.msra.mxu1 %v487_v3  ;;  %v471_v3 = vpop.f32.mrf.mxu0 }
  0xf3   :  { %1515 = vmatmul.mubr.msk.bf16.vlgmr.msra.gmra.mxu1 %vm176_vm1, %v486_v4  ;;  %v1505_v4 = vpop.f32.mrf.mxu0 }
  0xf4   :  { %1520 = vmatprep.mubr.msk.bf16.mxu1 %vm565_vm2, %v560_v41  ;;  %v1658_v41 = vld [vmem:[%s2213_s0 + $0x38] sm:$0xff]  }
  0xf5   :  { %v474_v17 = vpop.f32.mrf.mxu0 }
 0x1b3   :  { %v528_v42 = vpop.f32.mrf.mxu1 }
 0x1b4   :  { %v536_v46 = vsel %vm535_vm3, %v528_v42, -inf }
 0x1b5   :  { %v1516_v44 = vpop.f32.mrf.mxu1 }
 0x1b6   :  { %v472_v44 = vadd.f32 %v471_v3, %v1962_v34 }
 0x1b7   :  { %v531_v45 = vpop.f32.mrf.mxu1 }
 0x1b8   :  { %v537_v47 = vsel %vm535_vm3, %v531_v45, -inf }
 0x1b9   :  { %v538_v48 = vmax.f32 %v536_v46, %v537_v47  ;;  %v1517_v50 = vpop.f32.mrf.mxu1  ;;  %v1659_v46 = vld [vmem:[%s2213_s0 + $0x30] sm:$0xff]   ;;  %v1975_v47 = vpop.permute.xlu1 %358 }
 0x1bb   :  { %v539_v51 = vrot.slane %v538_v48, 4 }
 0x1bd   :  { %v540_v52 = vmax.f32 %v538_v48, %v539_v51  ;;  %v1977_v48 = vpop.permute.xlu0 %362  ;;  %v480_v51 = vadd.f32 %v1504_v2, %v1975_v47 }
 0x1bf   :  { %v541_v54 = vrot.slane %v540_v52, 2 }
 0x1c1   :  { %v542_v55 = vmax.f32 %v540_v52, %v541_v54  ;;  %v483_v52 = vadd.f32 %v1505_v4, %v1977_v48  ;;  %v1660_v54 = vld [vmem:[%s2213_s0 + $0x28] sm:$0xff]  }
 0x1c3   :  { %v543_v56 = vrot.slane %v542_v55, 1 }
 0x1c5   :  { %v544_v58 = vmax.f32 %v542_v55, %v543_v56  ;;  %v563_v55 = vpack.c.bf16 %v483_v52, %v480_v51  ;;  %v1661_v56 = vld [vmem:[%s2213_s0 + $0x20] sm:$0xff]  }
 0x1c7   :  { %v545_v60 = vsub.f32 %v528_v42, %v544_v58  ;;  %v546_v61 = vsub.f32 %v531_v45, %v544_v58  ;;  %v475_v45 = vadd.f32 %v474_v17, %v1964_v36  ;;  %v1663_v58 = vld [vmem:[%s2218_s2 + $0x30] sm:$0xff]  }
 0x1c9   :  { %v547_v63 = vmul.f32 1.442695, %v545_v60  ;;  %v549_v0 = vmul.f32 1.442695, %v546_v61  ;;  %v562_v50 = vpack.c.bf16 %v475_v45, %v472_v44  ;;  %v1665_v60 = vld [vmem:[%s2218_s2 + $0x20] sm:$0xff]  }
 0x1cb   :  { %1671 = vpow2.f32 %v547_v63 }
 0x1cc   :  { %1673 = vpow2.f32 %v549_v0 }
 0x1d8   :  { %v1672_v7 = vpop.eup %1671 }
 0x1d9   :  { %v1674_v25 = vpop.eup %1673  ;;  %v551_v32 = vsel %vm535_vm3, %v1672_v7, 0.0 }
 0x1da   :  { %v552_v37 = vsel %vm535_vm3, %v1674_v25, 0.0  ;;  %v564_v38 = vpack.c.bf16 %v1674_v25, %v1672_v7 }
 0x1db   :  { %v553_v42 = vadd.f32 %v552_v37, %v551_v32 }
 0x1dc   :  { %1518 = vmatprep.subr.bf16.mxu1 %v564_v38 }
 0x1dd   :  { %1519 = vmatpush3.bf16.msra.mxu1 %v564_v38 }
 0x1de   :  { %1544 = vmatprep.subr.bf16.mxu1 %v1658_v41 }
 0x1e0   :  { %1521 = vmatmul.mubr.msk.bf16.vlgmr.msra.gmra.mxu1 %vm565_vm2, %v561_v39  ;;  %v1662_v39 = vld [vmem:[%s2218_s2 + $0x38] sm:$0xff]  }
 0x1e1   :  { %1524 = vmatprep.mubr.msk.bf16.mxu1 %vm565_vm2, %v562_v50  ;;  %1545 = vmatpush3.bf16.msra.mxu1 %v1658_v41 }
 0x1e2   :  { %1546 = vmatprep.subr.bf16.mxu1 %v1659_v46 }
 0x1e5   :  { %1547 = vmatpush3.bf16.msra.mxu1 %v1659_v46 }
 0x1e6   :  { %1548 = vmatprep.subr.bf16.mxu1 %v1660_v54 }
 0x1e8   :  { %1525 = vmatmul.mubr.msk.bf16.gmra.mxu1 %vm565_vm2, %v563_v55  ;;  %v2034_v55 = vld [vmem:[%s2221_s6 + $0x8] sm:$0xff]  }
 0x1e9   :  { %1549 = vmatpush3.bf16.msra.mxu1 %v1660_v54  ;;  %1552 = vmatprep.mubr.msk.bf16.mxu1 %vm176_vm1, %v1753_v5  ;;  %v1664_v5 = vld [vmem:[%s2218_s2 + $0x28] sm:$0xff]  }
 0x1ea   :  { %1550 = vmatprep.subr.bf16.mxu1 %v1661_v56 }
 0x1ed   :  { %1551 = vmatpush3.bf16.msra.mxu1 %v1661_v56 }
 0x1ee   :  { %1572 = vmatprep.subr.bf16.mxu1 %v1662_v39 }
 0x1f0   :  { %1553 = vmatmul.mubr.msk.bf16.vlgmr.msra.gmra.mxu1 %vm176_vm1, %v1787_v11  ;;  %v1666_v11 = vld [vmem:[%s2221_s6] sm:$0xff]  }
 0x1f1   :  { %1573 = vmatpush3.bf16.msra.mxu1 %v1662_v39  ;;  %1556 = vmatprep.mubr.msk.bf16.mxu1 %vm176_vm1, %v1798_v13  ;;  %v1687_v13 = vmov 2   ;;  %v2039_v39 = vld [vmem:[%s2221_s6 + $0x10] sm:$0xff]  }
 0x1f2   :  { %1574 = vmatprep.subr.bf16.mxu1 %v1663_v58  ;;  %1536 = vmatprep.mubr.msk.bf16.mxu0 %vm176_vm1, %v1666_v11 }
 0x1f3   :  { %1635 = vset.pattern.permute.xlu1 %v1687_v13  ;;  %1636 = vset.pattern.permute.xlu0 %v1687_v13 }
 0x1f4   :  { %657 = vperm.xlu1 %1635, %v1850_v21   ;;  %661 = vperm.xlu0 %1636, %v1855_v22  }
 0x1f5   :  { %1575 = vmatpush3.bf16.msra.mxu1 %v1663_v58 }
 0x1f6   :  { %1576 = vmatprep.subr.bf16.mxu1 %v1664_v5 }
 0x1f8   :  { %1557 = vmatmul.mubr.msk.bf16.gmra.mxu1 %vm176_vm1, %v1842_v20  ;;  %665 = vperm.xlu1 %1635, %v1830_v18   ;;  %v554_v20 = vrot.slane %v553_v42, 4 }
 0x1f9   :  { %1577 = vmatpush3.bf16.msra.mxu1 %v1664_v5  ;;  %1580 = vmatprep.mubr.msk.bf16.mxu1 %vm176_vm1, %v1877_v27 }
 0x1fa   :  { %1578 = vmatprep.subr.bf16.mxu1 %v1665_v60  ;;  %673 = vperm.xlu0 %1636, %v1793_v12   ;;  %v555_v27 = vadd.f32 %v554_v20, %v553_v42  ;;  %v2059_v20 = vld [vmem:[%s2221_s6 + $0x18] sm:$0xff]  }
 0x1fc   :  { %669 = vperm.xlu1 %1635, %v1836_v19  }
 0x1fd   :  { %1579 = vmatpush3.bf16.msra.mxu1 %v1665_v60 }
 0x1fe   :  { %681 = vperm.xlu0 %1636, %v1782_v10  }
 0x200   :  { %1581 = vmatmul.mubr.msk.bf16.vlgmr.msra.gmra.mxu1 %vm176_vm1, %v1893_v29  ;;  %677 = vperm.xlu1 %1635, %v1815_v16   ;;  %v556_v29 = vrot.slane %v555_v27, 2 }
 0x201   :  { %1584 = vmatprep.mubr.msk.bf16.mxu1 %vm176_vm1, %v1898_v30 }
 0x202   :  { %v557_v30 = vadd.f32 %v556_v29, %v555_v27 }
 0x204   :  { %685 = vperm.xlu1 %1635, %v1808_v15  }
 0x208   :  { %1585 = vmatmul.mubr.msk.bf16.gmra.mxu1 %vm176_vm1, %v1907_v31  ;;  %v558_v31 = vrot.slane %v557_v30, 1 }
 0x209   :  { %1618 = vmatprep.mubr.msk.bf16.mxu1 %vm176_vm1, %v1666_v11 }
 0x20a   :  { %v559_v21 = vadd.f32 %v558_v31, %v557_v30 }
 0x20c   :  { %1675 = vrcp.f32 %v559_v21 }
 0x219   :  { %v1676_v19 = vpop.eup %1675 }
 0x26f   :  { %v2090_v21 = vpop.permute.xlu1 %657 }
 0x2a0   :  { %v1522_v22 = vpop.f32.mrf.mxu1 }
 0x2a1   :  { %v646_v38 = vmul.f32 %v1676_v19, %v1522_v22  ;;  %v2092_v22 = vpop.permute.xlu1 %665 }
 0x2a2   :  { %v612_v61 = vpop.f32.mrf.mxu1 }
 0x2a3   :  { %v644_v46 = vmul.f32 %v1676_v19, %v612_v61 }
 0x2a4   :  { %v1523_v18 = vpop.f32.mrf.mxu1 }
 0x2a5   :  { %v647_v25 = vmul.f32 %v1676_v19, %v1523_v18 }
 0x2a6   :  { %v615_v63 = vpop.f32.mrf.mxu1 }
 0x2a7   :  { %v653_v42 = vpack.c.bf16 %v647_v25, %v646_v38  ;;  %v645_v44 = vmul.f32 %v1676_v19, %v615_v63 }
 0x2a8   :  { %v1526_v12 = vpop.f32.mrf.mxu1 }
 0x2a9   :  { %v650_v10 = vmul.f32 %v1676_v19, %v1526_v12  ;;  %v652_v51 = vpack.c.bf16 %v645_v44, %v644_v46 }
 0x2aa   :  { %v628_v0 = vpop.f32.mrf.mxu1 }
 0x2ab   :  { %v648_v4 = vmul.f32 %v1676_v19, %v628_v0 }
 0x2ac   :  { %v1527_v2 = vpop.f32.mrf.mxu1 }
 0x2ad   :  { %v651_v3 = vmul.f32 %v1676_v19, %v1527_v2 }
 0x2ae   :  { %v631_v16 = vpop.f32.mrf.mxu1 }
 0x2af   :  { %v655_v15 = vpack.c.bf16 %v651_v3, %v650_v10  ;;  %v649_v7 = vmul.f32 %v1676_v19, %v631_v16 }
 0x2b0   :  { %v1554_v17 = vpop.f32.mrf.mxu1 }
 0x2b1   :  { %v654_v32 = vpack.c.bf16 %v649_v7, %v648_v4  ;;  %1528 = vmatprep.subr.bf16.mxu0 %v655_v15 }
 0x2b2   :  { %1529 = vmatpush3.bf16.msra.mxu0 %v655_v15  ;;  %v872_v37 = vpop.f32.mrf.mxu1 }
 0x2b3   :  { %1530 = vmatprep.subr.bf16.mxu0 %v654_v32  ;;  %v873_v31 = vadd.f32 %v872_v37, %v1932_v59 }
 0x2b4   :  { %v1555_v41 = vpop.f32.mrf.mxu1 }
 0x2b6   :  { %1531 = vmatpush3.bf16.msra.mxu0 %v654_v32  ;;  %v875_v45 = vpop.f32.mrf.mxu1 }
 0x2b7   :  { %1532 = vmatprep.subr.bf16.mxu0 %v653_v42 }
 0x2b8   :  { %v1558_v50 = vpop.f32.mrf.mxu1 }
 0x2ba   :  { %1533 = vmatpush3.bf16.msra.mxu0 %v653_v42  ;;  %v888_v52 = vpop.f32.mrf.mxu1 }
 0x2bb   :  { %1534 = vmatprep.subr.bf16.mxu0 %v652_v51  ;;  %v889_v29 = vadd.f32 %v888_v52, %v1911_v33 }
 0x2bc   :  { %v1559_v54 = vpop.f32.mrf.mxu1 }
 0x2be   :  { %1535 = vmatpush3.bf16.msra.mxu0 %v652_v51  ;;  %v891_v56 = vpop.f32.mrf.mxu1 }
 0x2bf   :  { %1560 = vmatprep.subr.bf16.mxu0 %v1683_v1 }
 0x2c0   :  { %v1582_v58 = vpop.f32.mrf.mxu1 }
 0x2c1   :  { %1537 = vmatmul.mubr.msk.bf16.vlgmr.msra.gmra.mxu0 %vm176_vm1, %v2034_v55  ;;  %v2051_v11 = vadd.f32 %v1582_v58, %v1950_v26  ;;  %v900_v26 = vadd.f32 %v1559_v54, %v1917_v43  ;;  %v884_v43 = vadd.f32 %v1555_v41, %v1921_v49  ;;  %v2094_v49 = vpop.permute.xlu0 %661 }
 0x2c2   :  { %1561 = vmatpush3.bf16.msra.mxu0 %v1760_v6  ;;  %v2045_v5 = vpop.f32.mrf.mxu1  ;;  %1540 = vmatprep.mubr.msk.bf16.mxu0 %vm176_vm1, %v2039_v39 }
 0x2c3   :  { %1562 = vmatprep.subr.bf16.mxu0 %v1683_v1  ;;  %v1011_v51 = vadd.f32 %v2045_v5, %v1948_v24 }
 0x2c4   :  { %v1583_v60 = vpop.f32.mrf.mxu1 }
 0x2c5   :  { %v2054_v13 = vadd.f32 %v1583_v60, %v1952_v28  ;;  %v897_v28 = vadd.f32 %v1558_v50, %v1913_v35  ;;  %v2098_v18 = vpop.permute.xlu0 %673 }
 0x2c6   :  { %1563 = vmatpush3.bf16.msra.mxu0 %v1769_v8  ;;  %v1670_v8 = vld [vmem:[%s2217_s1 + $0x8] sm:$0xff]   ;;  %v1013_v41 = vpop.f32.mrf.mxu1 }
 0x2c7   :  { %v1115_v6 = vpack.c.bf16 %v2054_v13, %v2051_v11  ;;  %1564 = vmatprep.subr.bf16.mxu0 %v1683_v1  ;;  %v1045_v27 = vpack.c.bf16 %v900_v26, %v897_v28  ;;  %v1014_v44 = vadd.f32 %v1013_v41, %v1946_v23 }
 0x2c9   :  { %1541 = vmatmul.mubr.msk.bf16.gmra.mxu0 %vm176_vm1, %v2059_v20  ;;  %v2113_v2 = vpop.permute.xlu0 %681 }
 0x2ca   :  { %1565 = vmatpush3.bf16.msra.mxu0 %v1776_v9  ;;  %1568 = vmatprep.mubr.msk.bf16.mxu0 %vm1684_vm0, %v1683_v1  ;;  %v892_v9 = vadd.f32 %v891_v56, %v1915_v40  ;;  %v876_v40 = vadd.f32 %v875_v45, %v1929_v57  ;;  %v1114_v56 = vpack.c.bf16 %v1014_v44, %v1011_v51 }
 0x2cb   :  { %1566 = vmatprep.subr.bf16.mxu0 %v1683_v1 }
 0x2cc   :  { %v1044_v35 = vpack.c.bf16 %v892_v9, %v889_v29  ;;  %v1042_v33 = vpack.c.bf16 %v876_v40, %v873_v31  ;;  %v1586_v31 = vpop.f32.mrf.mxu1 }
 0x2ce   :  { %1567 = vmatpush3.bf16.msra.mxu0 %v1803_v14  ;;  %v881_v14 = vadd.f32 %v1554_v17, %v1924_v53  ;;  %v2096_v53 = vpop.permute.xlu1 %669 }
 0x2cf   :  { %1588 = vmatprep.subr.bf16.mxu0 %v1683_v1 }
 0x2d0   :  { %v1043_v30 = vpack.c.bf16 %v884_v43, %v881_v14 }
 0x2d1   :  { %1569 = vmatmul.mubr.msk.bf16.vlgmr.msra.gmra.mxu0 %vm176_vm1, %v1670_v8 }
 0x2d2   :  { %1589 = vmatpush3.bf16.msra.mxu0 %v1045_v27  ;;  %1596 = vmatprep.mubr.msk.bf16.mxu0 %vm1684_vm0, %v1683_v1  ;;  %v2106_v12 = vpop.permute.xlu1 %677 }
 0x2d3   :  { %1590 = vmatprep.subr.bf16.mxu0 %v1683_v1 }
 0x2d6   :  { %1591 = vmatpush3.bf16.msra.mxu0 %v1044_v35  ;;  %v2125_v15 = vpop.permute.xlu1 %685 }
 0x2d7   :  { %1592 = vmatprep.subr.bf16.mxu0 %v1683_v1 }
 0x2da   :  { %1593 = vmatpush3.bf16.msra.mxu0 %v1043_v30 }
 0x2db   :  { %1594 = vmatprep.subr.bf16.mxu0 %v1683_v1 }
 0x2de   :  { %1595 = vmatpush3.bf16.msra.mxu0 %v1042_v33  ;;  %v1026_v33 = vpop.f32.mrf.mxu1 }
 0x381   :  { %v1538_v61 = vpop.f32.mrf.mxu0 }
 0x382   :  { %v763_v57 = vadd.f32 %v1538_v61, %v2092_v22  ;;  %v1587_v61 = vpop.f32.mrf.mxu1 }
 0x383   :  { %v754_v63 = vpop.f32.mrf.mxu0 }
 0x384   :  { %787 = vst.msk [vmem:[%s2222_s9 + $0x10] sm:$0xff] %vm535_vm3, %v763_v57  ;;  %v755_v1 = vadd.f32 %v754_v63, %v2090_v21  ;;  %v1029_v63 = vpop.f32.mrf.mxu1 }
 0x385   :  { %v1539_v59 = vpop.f32.mrf.mxu0 }
 0x386   :  { %785 = vst.msk [vmem:[%s2222_s9] sm:$0xff] %vm535_vm3, %v755_v1  ;;  %v766_v0 = vadd.f32 %v1539_v59, %v2096_v53 }
 0x387   :  { %v757_v19 = vpop.f32.mrf.mxu0 }
 0x388   :  { %788 = vst.msk [vmem:[%s2222_s9 + $0x18] sm:$0xff] %vm535_vm3, %v766_v0  ;;  %v758_v10 = vadd.f32 %v757_v19, %v2094_v49 }
 0x389   :  { %v1542_v3 = vpop.f32.mrf.mxu0 }
 0x38a   :  { %786 = vst.msk [vmem:[%s2222_s9 + $0x8] sm:$0xff] %vm535_vm3, %v758_v10  ;;  %v779_v16 = vadd.f32 %v1542_v3, %v2113_v2  ;;  %v1030_v10 = vadd.f32 %v1029_v63, %v1964_v36 }
 0x38b   :  { %v770_v4 = vpop.f32.mrf.mxu0 }
 0x38c   :  { %791 = vst.msk [vmem:[%s2222_s9 + $0x30] sm:$0xff] %vm535_vm3, %v779_v16  ;;  %v771_v7 = vadd.f32 %v770_v4, %v2098_v18  ;;  %v1027_v16 = vadd.f32 %v1026_v33, %v1962_v34 }
 0x38d   :  { %v1543_v17 = vpop.f32.mrf.mxu0 }
 0x38e   :  { %789 = vst.msk [vmem:[%s2222_s9 + $0x20] sm:$0xff] %vm535_vm3, %v771_v7  ;;  %v782_v25 = vadd.f32 %v1543_v17, %v2125_v15  ;;  %v1116_v4 = vpack.c.bf16 %v1030_v10, %v1027_v16  ;;  %v1038_v7 = vadd.f32 %v1587_v61, %v1977_v48  ;;  %v1035_v17 = vadd.f32 %v1586_v31, %v1975_v47 }
 0x38f   :  { %v773_v32 = vpop.f32.mrf.mxu0 }
 0x390   :  { %792 = vst.msk [vmem:[%s2222_s9 + $0x38] sm:$0xff] %vm535_vm3, %v782_v25  ;;  %v774_v37 = vadd.f32 %v773_v32, %v2106_v12  ;;  %v1117_v25 = vpack.c.bf16 %v1038_v7, %v1035_v17 }
 0x391   :  { %v945_v38 = vpop.f32.mrf.mxu0 }
 0x392   :  { %790 = vst.msk [vmem:[%s2222_s9 + $0x28] sm:$0xff] %vm535_vm3, %v774_v37  ;;  %v946_v46 = vadd.f32 %v1939_v62, %v945_v38 }
 0x393   :  { %v1570_v42 = vpop.f32.mrf.mxu0 }
 0x395   :  { %v948_v45 = vpop.f32.mrf.mxu0 }
 0x396   :  { %v949_v50 = vadd.f32 %v1939_v62, %v948_v45 }
 0x397   :  { %v1571_v52 = vpop.f32.mrf.mxu0 }
 0x398   :  { %v1041_v54 = vpack.c.bf16 %v949_v50, %v946_v46 }
 0x39a   :  { %1597 = vmatmul.mubr.msk.bf16.vlgmr.msra.gmra.mxu0 %vm176_vm1, %v1041_v54 }
 0x39b   :  { %1602 = vmatprep.mubr.msk.bf16.mxu0 %vm565_vm2, %v1114_v56 }
 0x45a   :  { %v1083_v58 = vpop.f32.mrf.mxu0 }
 0x45b   :  { %v1090_v23 = vsel %vm535_vm3, %v1083_v58, -inf }
 0x45c   :  { %v1598_v60 = vpop.f32.mrf.mxu0 }
 0x45e   :  { %v1086_v26 = vpop.f32.mrf.mxu0 }
 0x45f   :  { %v1091_v8 = vsel %vm535_vm3, %v1086_v26, -inf }
 0x460   :  { %v1092_v28 = vmax.f32 %v1090_v23, %v1091_v8  ;;  %v1599_v27 = vpop.f32.mrf.mxu0 }
 0x462   :  { %v1093_v62 = vrot.slane %v1092_v28, 4 }
 0x464   :  { %v1094_v9 = vmax.f32 %v1092_v28, %v1093_v62 }
 0x466   :  { %v1095_v29 = vrot.slane %v1094_v9, 2 }
 0x468   :  { %v1096_v24 = vmax.f32 %v1094_v9, %v1095_v29 }
 0x46a   :  { %v1097_v5 = vrot.slane %v1096_v24, 1 }
 0x46c   :  { %v1098_v43 = vmax.f32 %v1096_v24, %v1097_v5 }
 0x46e   :  { %v1099_v35 = vsub.f32 %v1083_v58, %v1098_v43  ;;  %v1100_v14 = vsub.f32 %v1086_v26, %v1098_v43 }
 0x470   :  { %v1101_v30 = vmul.f32 1.442695, %v1099_v35  ;;  %v1103_v40 = vmul.f32 1.442695, %v1100_v14 }
 0x472   :  { %1677 = vpow2.f32 %v1101_v30 }
 0x473   :  { %1679 = vpow2.f32 %v1103_v40 }
 0x47f   :  { %v1678_v57 = vpop.eup %1677 }
 0x480   :  { %v1680_v1 = vpop.eup %1679  ;;  %v1105_v59 = vsel %vm535_vm3, %v1678_v57, 0.0 }
 0x481   :  { %v1106_v0 = vsel %vm535_vm3, %v1680_v1, 0.0  ;;  %v1118_v19 = vpack.c.bf16 %v1680_v1, %v1678_v57 }
 0x482   :  { %v1107_v3 = vadd.f32 %v1106_v0, %v1105_v59 }
 0x483   :  { %1600 = vmatprep.subr.bf16.mxu0 %v1118_v19 }
 0x484   :  { %1601 = vmatpush3.bf16.msra.mxu0 %v1118_v19  ;;  %v1108_v36 = vrot.slane %v1107_v3, 4 }
 0x486   :  { %v1109_v32 = vadd.f32 %v1108_v36, %v1107_v3 }
 0x487   :  { %1603 = vmatmul.mubr.msk.bf16.vlgmr.msra.gmra.mxu0 %vm565_vm2, %v1115_v6 }
 0x488   :  { %1606 = vmatprep.mubr.msk.bf16.mxu0 %vm565_vm2, %v1116_v4  ;;  %v1110_v37 = vrot.slane %v1109_v32, 2 }
 0x48a   :  { %v1111_v34 = vadd.f32 %v1110_v37, %v1109_v32 }
 0x48c   :  { %v1112_v38 = vrot.slane %v1111_v34, 1 }
 0x48e   :  { %v1113_v41 = vadd.f32 %v1112_v38, %v1111_v34 }
 0x48f   :  { %1607 = vmatmul.mubr.msk.bf16.gmra.mxu0 %vm565_vm2, %v1117_v25 }
 0x490   :  { %1681 = vrcp.f32 %v1113_v41 }
 0x49d   :  { %v1682_v46 = vpop.eup %1681 }
 0x547   :  { %v1604_v42 = vpop.f32.mrf.mxu0 }
 0x548   :  { %v1199_v26 = vmul.f32 %v1682_v46, %v1604_v42 }
 0x549   :  { %v1165_v11 = vpop.f32.mrf.mxu0 }
 0x54a   :  { %v1197_v28 = vmul.f32 %v1682_v46, %v1165_v11 }
 0x54b   :  { %v1605_v13 = vpop.f32.mrf.mxu0 }
 0x54c   :  { %v1200_v58 = vmul.f32 %v1682_v46, %v1605_v13 }
 0x54d   :  { %v1168_v6 = vpop.f32.mrf.mxu0 }
 0x54e   :  { %v1206_v23 = vpack.c.bf16 %v1200_v58, %v1199_v26  ;;  %v1198_v8 = vmul.f32 %v1682_v46, %v1168_v6 }
 0x54f   :  { %v1608_v44 = vpop.f32.mrf.mxu0 }
 0x550   :  { %v1203_v50 = vmul.f32 %v1682_v46, %v1608_v44  ;;  %v1205_v27 = vpack.c.bf16 %v1198_v8, %v1197_v28 }
 0x551   :  { %v1181_v45 = vpop.f32.mrf.mxu0 }
 0x552   :  { %v1201_v52 = vmul.f32 %v1682_v46, %v1181_v45 }
 0x553   :  { %v1609_v48 = vpop.f32.mrf.mxu0 }
 0x554   :  { %v1204_v47 = vmul.f32 %v1682_v46, %v1609_v48 }
 0x555   :  { %v1184_v51 = vpop.f32.mrf.mxu0 }
 0x556   :  { %v1208_v54 = vpack.c.bf16 %v1204_v47, %v1203_v50  ;;  %v1202_v56 = vmul.f32 %v1682_v46, %v1184_v51 }
 0x558   :  { %v1207_v60 = vpack.c.bf16 %v1202_v56, %v1201_v52  ;;  %1610 = vmatprep.subr.bf16.mxu1 %v1208_v54 }
 0x559   :  { %1611 = vmatpush3.bf16.msra.mxu1 %v1208_v54 }
 0x55a   :  { %1612 = vmatprep.subr.bf16.mxu1 %v1207_v60 }
 0x55d   :  { %1613 = vmatpush3.bf16.msra.mxu1 %v1207_v60 }
 0x55e   :  { %1614 = vmatprep.subr.bf16.mxu1 %v1206_v23 }
 0x561   :  { %1615 = vmatpush3.bf16.msra.mxu1 %v1206_v23 }
 0x562   :  { %1616 = vmatprep.subr.bf16.mxu1 %v1205_v27 }
 0x565   :  { %1617 = vmatpush3.bf16.msra.mxu1 %v1205_v27 }
 0x568   :  { %1619 = vmatmul.mubr.msk.bf16.vlgmr.msra.gmra.mxu1 %vm176_vm1, %v2034_v55 }
 0x569   :  { %1622 = vmatprep.mubr.msk.bf16.mxu1 %vm176_vm1, %v2039_v39 }
 0x570   :  { %1623 = vmatmul.mubr.msk.bf16.gmra.mxu1 %vm176_vm1, %v2059_v20 }
 0x628   :  { %v1620_v62 = vpop.f32.mrf.mxu1 }
 0x629   :  { %v1252_v9 = vadd.f32 %v1620_v62, %v2092_v22 }
 0x62a   :  { %v1243_v29 = vpop.f32.mrf.mxu1 }
 0x62b   :  { %1378 = vst.msk [vmem:[%s2222_s9 + $0x50] sm:$0xff] %vm535_vm3, %v1252_v9  ;;  %v1244_v24 = vadd.f32 %v1243_v29, %v2090_v21 }
 0x62c   :  { %v1621_v5 = vpop.f32.mrf.mxu1 }
 0x62d   :  { %1376 = vst.msk [vmem:[%s2222_s9 + $0x40] sm:$0xff] %vm535_vm3, %v1244_v24  ;;  %v1255_v55 = vadd.f32 %v1621_v5, %v2096_v53 }
 0x62e   :  { %v1246_v39 = vpop.f32.mrf.mxu1 }
 0x62f   :  { %1379 = vst.msk [vmem:[%s2222_s9 + $0x58] sm:$0xff] %vm535_vm3, %v1255_v55  ;;  %v1247_v20 = vadd.f32 %v1246_v39, %v2094_v49 }
 0x630   :  { %v1624_v22 = vpop.f32.mrf.mxu1 }
 0x631   :  { %1377 = vst.msk [vmem:[%s2222_s9 + $0x48] sm:$0xff] %vm535_vm3, %v1247_v20  ;;  %v1268_v21 = vadd.f32 %v1624_v22, %v2113_v2 }
 0x632   :  { %v1259_v43 = vpop.f32.mrf.mxu1 }
 0x633   :  { %1382 = vst.msk [vmem:[%s2222_s9 + $0x70] sm:$0xff] %vm535_vm3, %v1268_v21  ;;  %v1260_v53 = vadd.f32 %v1259_v43, %v2098_v18 }
 0x634   :  { %v1625_v35 = vpop.f32.mrf.mxu1 }
 0x635   :  { %1380 = vst.msk [vmem:[%s2222_s9 + $0x60] sm:$0xff] %vm535_vm3, %v1260_v53  ;;  %v1271_v49 = vadd.f32 %v1625_v35, %v2125_v15 }
 0x636   :  { %v1262_v14 = vpop.f32.mrf.mxu1 }
 0x637   :  { %1383 = vst.msk [vmem:[%s2222_s9 + $0x78] sm:$0xff] %vm535_vm3, %v1271_v49  ;;  %v1263_v2 = vadd.f32 %v1262_v14, %v2106_v12 }
 0x639   :  { %1381 = vst.msk [vmem:[%s2222_s9 + $0x68] sm:$0xff] %vm535_vm3, %v1263_v2 }

</bundles_post_ra>
